<compile_context>
chip_gen: v7x
topology: tpu7x:2x2x1
jax: 0.10.0
libtpu: 0.0.40
codegen_flags: <defaults>
</compile_context>

<pallas_src>
import jax
import jax.numpy as jnp
from jax.experimental import pallas as pl
from jax.experimental.pallas import tpu as pltpu


def _round_up(x, m):
    return ((x + m - 1) // m) * m


def _pointnet_head_kernel(x_ref, w1_ref, b1_ref, w2_ref, b2_ref, w3_ref, b3_ref,
                          out_ref):
    x = x_ref[...]

    # fc_1 (BN folded into weights/bias) -> relu
    h1 = jnp.dot(x, w1_ref[...], preferred_element_type=jnp.float32) + b1_ref[...]
    h1 = jnp.maximum(h1, 0.0)

    # fc_2 (BN folded into weights/bias) -> relu
    h2 = jnp.dot(h1.astype(w2_ref.dtype), w2_ref[...],
                 preferred_element_type=jnp.float32) + b2_ref[...]
    h2 = jnp.maximum(h2, 0.0)

    # dropout (eval mode) == identity

    # fc_3 -> log_softmax over the (padded, lane-dense) class axis.
    logits = jnp.dot(h2.astype(w3_ref.dtype), w3_ref[...],
                     preferred_element_type=jnp.float32) + b3_ref[...]
    m = jnp.max(logits, axis=-1, keepdims=True)
    z = logits - m
    lse = jnp.log(jnp.sum(jnp.exp(z), axis=-1, keepdims=True))
    out_ref[...] = (z - lse).astype(out_ref.dtype)


def classification_pointnet_forward(x, params, *, block_rows=512,
                                    compute_dtype=jnp.float32):
    """x: any shape with trailing elements reshapable to (-1, 256)."""
    x2d = x.reshape(-1, 256)
    B = x2d.shape[0]
    C = params["w3"].shape[1]
    eps = 1e-5

    # --- Fold eval-mode BatchNorm into the fc weights / biases -------------
    s1 = params["bn1_gamma"] / jnp.sqrt(params["bn1_var"] + eps)
    s2 = params["bn2_gamma"] / jnp.sqrt(params["bn2_var"] + eps)
    w1 = (params["w1"] * s1[None, :]).astype(compute_dtype)
    b1 = ((params["b1"] - params["bn1_mean"]) * s1
          + params["bn1_beta"]).reshape(1, -1).astype(jnp.float32)
    w2 = (params["w2"] * s2[None, :]).astype(compute_dtype)
    b2 = ((params["b2"] - params["bn2_mean"]) * s2
          + params["bn2_beta"]).reshape(1, -1).astype(jnp.float32)

    # --- Pad class axis to 128 lanes (lane-dense stores, full MXU N) -------
    # -1e30 bias padding => exp(pad - max) == 0, so the lse is unchanged.
    Cp = max(128, _round_up(C, 128))
    w3 = jnp.zeros((64, Cp), compute_dtype).at[:, :C].set(
        params["w3"].astype(compute_dtype))
    b3 = jnp.full((1, Cp), -1e30, jnp.float32).at[0, :C].set(
        params["b3"].astype(jnp.float32))

    # --- Batch tiling: pad rows up to a multiple of the tile ---------------
    TB = min(block_rows, _round_up(B, 8))
    Bp = _round_up(B, TB)
    xp = jnp.zeros((Bp, 256), compute_dtype).at[:B].set(x2d.astype(compute_dtype))

    grid = (Bp // TB,)

    def resident(shape):
        # Full-array block, same index every grid step -> stays VMEM-resident.
        return pl.BlockSpec(shape, lambda i: (0, 0))

    cost = pl.CostEstimate(
        flops=2 * Bp * (256 * 128 + 128 * 64 + 64 * Cp),
        transcendentals=Bp * (Cp + 1),
        bytes_accessed=(xp.size * xp.dtype.itemsize
                        + w1.size * w1.dtype.itemsize
                        + w2.size * w2.dtype.itemsize
                        + w3.size * w3.dtype.itemsize
                        + (b1.size + b2.size + b3.size) * 4
                        + Bp * Cp * 4),
    )

    out = pl.pallas_call(
        _pointnet_head_kernel,
        out_shape=jax.ShapeDtypeStruct((Bp, Cp), jnp.float32),
        grid=grid,
        in_specs=[
            pl.BlockSpec((TB, 256), lambda i: (i, 0)),   # x tile, pipelined
            resident(w1.shape), resident(b1.shape),
            resident(w2.shape), resident(b2.shape),
            resident(w3.shape), resident(b3.shape),
        ],
        out_specs=pl.BlockSpec((TB, Cp), lambda i: (i, 0)),
        compiler_params=pltpu.CompilerParams(
            dimension_semantics=("parallel",)),
        cost_estimate=cost,
    )(xp, w1, b1, w2, b2, w3, b3)

    return out[:B, :C]


def init_params(key, num_classes):
    ks = jax.random.split(key, 6)
    p = {
        # Linear weights stored [in, out] (transpose of PyTorch's [out, in]).
        "w1": jax.random.normal(ks[0], (256, 128), jnp.float32) * 0.05,
        "b1": jax.random.normal(ks[1], (128,), jnp.float32) * 0.01,
        "w2": jax.random.normal(ks[2], (128, 64), jnp.float32) * 0.05,
        "b2": jax.random.normal(ks[3], (64,), jnp.float32) * 0.01,
        "w3": jax.random.normal(ks[4], (64, num_classes), jnp.float32) * 0.05,
        "b3": jax.random.normal(ks[5], (num_classes,), jnp.float32) * 0.01,
        # BatchNorm1d parameters / running stats (deterministic, eval mode).
        "bn1_gamma": jnp.ones((128,), jnp.float32),
        "bn1_beta": jnp.zeros((128,), jnp.float32),
        "bn1_mean": jnp.zeros((128,), jnp.float32),
        "bn1_var": jnp.ones((128,), jnp.float32),
        "bn2_gamma": jnp.ones((64,), jnp.float32),
        "bn2_beta": jnp.zeros((64,), jnp.float32),
        "bn2_mean": jnp.zeros((64,), jnp.float32),
        "bn2_var": jnp.ones((64,), jnp.float32),
    }
    return p


def _reference_forward(x, params):
    eps = 1e-5
    x2d = x.reshape(-1, 256)
    h1 = x2d @ params["w1"] + params["b1"]
    h1 = (h1 - params["bn1_mean"]) / jnp.sqrt(params["bn1_var"] + eps)
    h1 = jnp.maximum(h1 * params["bn1_gamma"] + params["bn1_beta"], 0.0)
    h2 = h1 @ params["w2"] + params["b2"]
    h2 = (h2 - params["bn2_mean"]) / jnp.sqrt(params["bn2_var"] + eps)
    h2 = jnp.maximum(h2 * params["bn2_gamma"] + params["bn2_beta"], 0.0)
    logits = h2 @ params["w3"] + params["b3"]
    return jax.nn.log_softmax(logits, axis=1)


if __name__ == "__main__":
    key = jax.random.PRNGKey(0)
    k_x, k_p = jax.random.split(key)

    num_classes = 10
    # Input: anything that views to (-1, 256); PointNet passes a pooled feature.
    x = jax.random.normal(k_x, (2, 8, 256), jnp.float32)
    params = init_params(k_p, num_classes)

    ref = _reference_forward(x, params)

    # f32 path (matches PyTorch eval-mode semantics to f32 matmul precision).
    out = jax.block_until_ready(classification_pointnet_forward(x, params))
    assert out.shape == (16, num_classes)
    assert jnp.allclose(out, ref, atol=1e-4, rtol=1e-4)

    # bf16 matmul-input fast path (v6e/v7x MXU); f32 accumulation, looser tol.
    out_bf16 = jax.block_until_ready(
        classification_pointnet_forward(x, params, compute_dtype=jnp.bfloat16))
    assert out_bf16.shape == (16, num_classes)
    assert jnp.allclose(out_bf16, ref, atol=5e-2, rtol=5e-2)

    print("KERNEL_OK")
</pallas_src>

<mosaic_0001>
module attributes {stable_mosaic.version = 11 : i64} {
  func.func @_pointnet_head_kernel(%arg0: i32, %arg1: memref<16x256xf32, #tpu.memory_space<vmem>>, %arg2: memref<256x128xf32, #tpu.memory_space<vmem>>, %arg3: memref<1x128xf32, #tpu.memory_space<vmem>>, %arg4: memref<128x64xf32, #tpu.memory_space<vmem>>, %arg5: memref<1x64xf32, #tpu.memory_space<vmem>>, %arg6: memref<64x128xf32, #tpu.memory_space<vmem>>, %arg7: memref<1x128xf32, #tpu.memory_space<vmem>>, %arg8: memref<16x128xf32, #tpu.memory_space<vmem>>) attributes {dimension_semantics = [#tpu.dimension_semantics<parallel>], iteration_bounds = array<i64: 1>, scalar_prefetch = 0 : i64, scratch_operands = 0 : i64, tpu.core_type = #tpu.core_type<tc>, window_params = [{transform_indices = @transform_0, window_bounds = array<i64: 16, 256>}, {pipeline_mode = #tpu.pipeline_mode<synchronous>, transform_indices = @transform_1, window_bounds = array<i64: 256, 128>}, {pipeline_mode = #tpu.pipeline_mode<synchronous>, transform_indices = @transform_2, window_bounds = array<i64: 1, 128>}, {pipeline_mode = #tpu.pipeline_mode<synchronous>, transform_indices = @transform_3, window_bounds = array<i64: 128, 64>}, {pipeline_mode = #tpu.pipeline_mode<synchronous>, transform_indices = @transform_4, window_bounds = array<i64: 1, 64>}, {pipeline_mode = #tpu.pipeline_mode<synchronous>, transform_indices = @transform_5, window_bounds = array<i64: 64, 128>}, {pipeline_mode = #tpu.pipeline_mode<synchronous>, transform_indices = @transform_6, window_bounds = array<i64: 1, 128>}, {transform_indices = @transform_7, window_bounds = array<i64: 16, 128>}]} {
    %c0 = arith.constant 0 : index
    %c0_0 = arith.constant 0 : index
    %0 = vector.load %arg1[%c0, %c0_0] : memref<16x256xf32, #tpu.memory_space<vmem>>, vector<16x256xf32>
    %c0_1 = arith.constant 0 : index
    %c0_2 = arith.constant 0 : index
    %1 = vector.load %arg2[%c0_1, %c0_2] : memref<256x128xf32, #tpu.memory_space<vmem>>, vector<256x128xf32>
    %cst = arith.constant dense<0.000000e+00> : vector<16x128xf32>
    %2 = tpu.matmul %0, %1, %cst {dimension_numbers = #tpu.dot_dimension_numbers<[1], [0], [0], [1], [0, 0, 1, 1], [], []>} : vector<16x256xf32>, vector<256x128xf32>, vector<16x128xf32> -> vector<16x128xf32>
    %c0_3 = arith.constant 0 : index
    %c0_4 = arith.constant 0 : index
    %3 = vector.load %arg3[%c0_3, %c0_4] : memref<1x128xf32, #tpu.memory_space<vmem>>, vector<1x128xf32>
    %4 = vector.broadcast %3 : vector<1x128xf32> to vector<16x128xf32>
    %5 = arith.addf %2, %4 : vector<16x128xf32>
    %cst_5 = arith.constant 0.000000e+00 : f32
    %6 = vector.broadcast %cst_5 : f32 to vector<16x128xf32>
    %7 = arith.maximumf %5, %6 : vector<16x128xf32>
    %c0_6 = arith.constant 0 : index
    %c0_7 = arith.constant 0 : index
    %8 = vector.load %arg4[%c0_6, %c0_7] : memref<128x64xf32, #tpu.memory_space<vmem>>, vector<128x64xf32>
    %cst_8 = arith.constant dense<0.000000e+00> : vector<16x64xf32>
    %9 = tpu.matmul %7, %8, %cst_8 {dimension_numbers = #tpu.dot_dimension_numbers<[1], [0], [0], [1], [0, 0, 1, 1], [], []>} : vector<16x128xf32>, vector<128x64xf32>, vector<16x64xf32> -> vector<16x64xf32>
    %c0_9 = arith.constant 0 : index
    %c0_10 = arith.constant 0 : index
    %10 = vector.load %arg5[%c0_9, %c0_10] : memref<1x64xf32, #tpu.memory_space<vmem>>, vector<1x64xf32>
    %11 = vector.broadcast %10 : vector<1x64xf32> to vector<16x64xf32>
    %12 = arith.addf %9, %11 : vector<16x64xf32>
    %cst_11 = arith.constant 0.000000e+00 : f32
    %13 = vector.broadcast %cst_11 : f32 to vector<16x64xf32>
    %14 = arith.maximumf %12, %13 : vector<16x64xf32>
    %c0_12 = arith.constant 0 : index
    %c0_13 = arith.constant 0 : index
    %15 = vector.load %arg6[%c0_12, %c0_13] : memref<64x128xf32, #tpu.memory_space<vmem>>, vector<64x128xf32>
    %cst_14 = arith.constant dense<0.000000e+00> : vector<16x128xf32>
    %16 = tpu.matmul %14, %15, %cst_14 {dimension_numbers = #tpu.dot_dimension_numbers<[1], [0], [0], [1], [0, 0, 1, 1], [], []>} : vector<16x64xf32>, vector<64x128xf32>, vector<16x128xf32> -> vector<16x128xf32>
    %c0_15 = arith.constant 0 : index
    %c0_16 = arith.constant 0 : index
    %17 = vector.load %arg7[%c0_15, %c0_16] : memref<1x128xf32, #tpu.memory_space<vmem>>, vector<1x128xf32>
    %18 = vector.broadcast %17 : vector<1x128xf32> to vector<16x128xf32>
    %19 = arith.addf %16, %18 : vector<16x128xf32>
    %cst_17 = arith.constant dense<0xFF800000> : vector<16xf32>
    %20 = vector.multi_reduction <maximumf>, %19, %cst_17 [1] : vector<16x128xf32> to vector<16xf32>
    %21 = vector.shape_cast %20 : vector<16xf32> to vector<16x1xf32>
    %22 = vector.broadcast %21 : vector<16x1xf32> to vector<16x128xf32>
    %23 = arith.subf %19, %22 : vector<16x128xf32>
    %24 = math.exp %23 : vector<16x128xf32>
    %cst_18 = arith.constant dense<0.000000e+00> : vector<16xf32>
    %25 = vector.multi_reduction <add>, %24, %cst_18 [1] : vector<16x128xf32> to vector<16xf32>
    %26 = vector.shape_cast %25 : vector<16xf32> to vector<16x1xf32>
    %27 = math.log %26 : vector<16x1xf32>
    %28 = vector.broadcast %27 : vector<16x1xf32> to vector<16x128xf32>
    %29 = arith.subf %23, %28 : vector<16x128xf32>
    %c0_19 = arith.constant 0 : index
    %c0_20 = arith.constant 0 : index
    %30 = vector.load %arg8[%c0_19, %c0_20] : memref<16x128xf32, #tpu.memory_space<vmem>>, vector<16x128xf32>
    tpu.vector_store %arg8[%c0_19, %c0_20], %29 {strides = array<i32>} : memref<16x128xf32, #tpu.memory_space<vmem>>, vector<16x128xf32>,
    return
  }
  func.func @transform_0(%arg0: i32) -> (i32, i32) {
    %c0_i32 = arith.constant 0 : i32
    %c0_i32_0 = arith.constant 0 : i32
    return %arg0, %c0_i32 : i32, i32
  }
  func.func @transform_1(%arg0: i32) -> (i32, i32) {
    %c0_i32 = arith.constant 0 : i32
    %c0_i32_0 = arith.constant 0 : i32
    %c0_i32_1 = arith.constant 0 : i32
    return %c0_i32, %c0_i32_0 : i32, i32
  }
  func.func @transform_2(%arg0: i32) -> (i32, i32) {
    %c0_i32 = arith.constant 0 : i32
    %c0_i32_0 = arith.constant 0 : i32
    %c0_i32_1 = arith.constant 0 : i32
    return %c0_i32, %c0_i32_0 : i32, i32
  }
  func.func @transform_3(%arg0: i32) -> (i32, i32) {
    %c0_i32 = arith.constant 0 : i32
    %c0_i32_0 = arith.constant 0 : i32
    %c0_i32_1 = arith.constant 0 : i32
    return %c0_i32, %c0_i32_0 : i32, i32
  }
  func.func @transform_4(%arg0: i32) -> (i32, i32) {
    %c0_i32 = arith.constant 0 : i32
    %c0_i32_0 = arith.constant 0 : i32
    %c0_i32_1 = arith.constant 0 : i32
    return %c0_i32, %c0_i32_0 : i32, i32
  }
  func.func @transform_5(%arg0: i32) -> (i32, i32) {
    %c0_i32 = arith.constant 0 : i32
    %c0_i32_0 = arith.constant 0 : i32
    %c0_i32_1 = arith.constant 0 : i32
    return %c0_i32, %c0_i32_0 : i32, i32
  }
  func.func @transform_6(%arg0: i32) -> (i32, i32) {
    %c0_i32 = arith.constant 0 : i32
    %c0_i32_0 = arith.constant 0 : i32
    %c0_i32_1 = arith.constant 0 : i32
    return %c0_i32, %c0_i32_0 : i32, i32
  }
  func.func @transform_7(%arg0: i32) -> (i32, i32) {
    %c0_i32 = arith.constant 0 : i32
    %c0_i32_0 = arith.constant 0 : i32
    return %arg0, %c0_i32 : i32, i32
  }
}

</mosaic_0001>

<bundles_post_ra>
// kernel: tpu_custom_call.1
= control target key start
LH: loop header
LB: loop body
LE: loop exit
PB: predicated region body
PF: predicated region fallthrough
CT: control target
= control target key end

     0   :  { %12 = vsyncpa [#allocation3], 0  ;;  %s829_s0 = inlined_call_operand.vmem [shape: f32[16,256], index: 0, kind: input, shape index: {}]   ;;  %s830_s1 = inlined_call_operand.hbm [shape: f32[256,128], index: 1, kind: input, shape index: {}]   ;;  %s831_s2 = inlined_call_operand.vmem [shape: f32[1,128], index: 2, kind: input, shape index: {}]   ;;  %s832_s3 = inlined_call_operand.vmem [shape: f32[128,64], index: 3, kind: input, shape index: {}]   ;;  %s833_s4 = inlined_call_operand.vmem [shape: f32[1,64], index: 4, kind: input, shape index: {}]   ;;  %s834_s5 = inlined_call_operand.vmem [shape: f32[64,128], index: 5, kind: input, shape index: {}]   ;;  %s835_s6 = inlined_call_operand.vmem [shape: f32[1,128], index: 6, kind: input, shape index: {}]   ;;  %s836_s7 = inlined_call_operand.hbm [shape: f32[16,128], index: 7, kind: output, shape index: {}]  }
   0x1   :  { %13 = vsyncpa [#allocation4], 0  ;;  %s662_s24 = smov [#allocation2]   ;;  %s614_s28 = scalar_lea.hbm %s830_s1, 4096 }
   0x2   :  { %s21_s25 = sshll.u32 %s662_s24, 4  ;;  %p615_p0 = scmp.ne.s32.totalorder %s830_s1, %s614_s28  ;;  %s22_s25 = int_to_ptr.vmem [resolvable:$true] %s21_s25 }
   0x3   :  { %p618_p1 = scmp.lt.u32.totalorder %s614_s28, %s830_s1 }
   0x5   :  { %p620_p2 = pnand %p618_p1, %p615_p0 }
   0x7   :  { %623 = shalt.err (!%p620_p2)
}
   0x8   :  { %s624_s10 = scalar_lea.vmem %s22_s25, 4096  ;;  %p629_p4 = scmp.lt.s32.totalorder %s22_s25, %s22_s25 }
   0x9   :  { %p625_p3 = scmp.ne.s32.totalorder %s22_s25, %s624_s10  ;;  %p630_p5 = scmp.lt.s32.totalorder %s624_s10, %s624_s10 }
   0xb   :  { %p631_p6 = por %p630_p5, %p629_p4 }
   0xd   :  { %p632_p7 = pnand %p631_p6, %p625_p3 }
   0xf   :  { %635 = shalt.err (!%p632_p7)
}
  0x10   :  { %s663_s11 = smov 128   ;;  %s664_s12 = smov 8  }
  0x11   :  { %27 = dma.hbm_to_vmem [thread:$0]  %s830_s1, 4096, %s22_s25, [#allocation3], %s663_s11, %s663_s11, %s664_s12  }
  0x12   :  { %658 = dma.done.wait [#allocation3], 4096  }
  0x13   :  { %659 = vsyncadd [#allocation3], 4294963200  ;;  %v61_v0 = vld [vmem:[#allocation2 + $0x80] sm:$0xff]  ;;  %v62_v1 = vld [vmem:[#allocation2 + $0x88] sm:$0xff]  ;;  %vm276_vm0 = vcmask 523264  }
  0x14   :  { %v45_v2 = vld [vmem:[#allocation2] sm:$0xff]  ;;  %v522_v3 = vpack.c.bf16 %v62_v1, %v61_v0  ;;  %v46_v4 = vld [vmem:[#allocation2 + $0x8] sm:$0xff]  ;;  %v63_v5 = vld [vmem:[#allocation2 + $0x90] sm:$0xff] }
  0x15   :  { %v64_v6 = vld [vmem:[#allocation2 + $0x98] sm:$0xff]  ;;  %v524_v7 = vpack.c.bf16 %v46_v4, %v45_v2  ;;  %v47_v9 = vld [vmem:[#allocation2 + $0x10] sm:$0xff]  ;;  %v65_v11 = vld [vmem:[#allocation2 + $0xa0] sm:$0xff] }
  0x16   :  { %v526_v8 = vpack.c.bf16 %v64_v6, %v63_v5  ;;  %v48_v10 = vld [vmem:[#allocation2 + $0x18] sm:$0xff]  ;;  %523 = vmatprep.subr.bf16.mxu0 %v522_v3  ;;  %v66_v12 = vld [vmem:[#allocation2 + $0xa8] sm:$0xff]  ;;  %v49_v15 = vld [vmem:[#allocation2 + $0x20] sm:$0xff] }
  0x17   :  { %525 = vmatpush3.bf16.msra.mxu0 %v524_v7  ;;  %v528_v13 = vpack.c.bf16 %v48_v10, %v47_v9  ;;  %v530_v14 = vpack.c.bf16 %v66_v12, %v65_v11  ;;  %v50_v16 = vld [vmem:[#allocation2 + $0x28] sm:$0xff]  ;;  %v67_v17 = vld [vmem:[#allocation2 + $0xb0] sm:$0xff]  ;;  %v68_v18 = vld [vmem:[#allocation2 + $0xb8] sm:$0xff] }
  0x18   :  { %527 = vmatprep.subr.bf16.mxu0 %v526_v8  ;;  %v532_v19 = vpack.c.bf16 %v50_v16, %v49_v15  ;;  %v534_v20 = vpack.c.bf16 %v68_v18, %v67_v17  ;;  %v51_v21 = vld [vmem:[#allocation2 + $0x30] sm:$0xff]  ;;  %v52_v22 = vld [vmem:[#allocation2 + $0x38] sm:$0xff]  ;;  %v69_v23 = vld [vmem:[#allocation2 + $0xc0] sm:$0xff] }
  0x19   :  { %v70_v24 = vld [vmem:[#allocation2 + $0xc8] sm:$0xff]  ;;  %v53_v26 = vld [vmem:[#allocation2 + $0x40] sm:$0xff]  ;;  %v536_v27 = vpack.c.bf16 %v52_v22, %v51_v21  ;;  %v163_v30 = vld [vmem:[%s832_s3 + $0x10] sm:$0xff] }
  0x1a   :  { %v42_v25 = vld [vmem:[%s829_s0 + $0x8] sm:$0xff]  ;;  %v161_v28 = vld [vmem:[%s832_s3] sm:$0xff]  ;;  %v538_v31 = vpack.c.bf16 %v70_v24, %v69_v23  ;;  %v71_v33 = vld [vmem:[#allocation2 + $0xd0] sm:$0xff] }
  0x1b   :  { %529 = vmatpush3.bf16.msra.mxu0 %v528_v13  ;;  %148 = vmatprep.mubr.f32.mxu0 %v42_v25  ;;  %v162_v29 = vld [vmem:[%s832_s3 + $0x8] sm:$0xff]  ;;  %v164_v35 = vld [vmem:[%s832_s3 + $0x18] sm:$0xff]  ;;  %v165_v38 = vld [vmem:[%s832_s3 + $0x20] sm:$0xff] }
  0x1c   :  { %531 = vmatprep.subr.bf16.mxu0 %v530_v14  ;;  %v54_v32 = vld [vmem:[#allocation2 + $0x48] sm:$0xff]  ;;  %v554_v34 = vpack.c.bf16 %v162_v29, %v161_v28  ;;  %v72_v36 = vld [vmem:[#allocation2 + $0xd8] sm:$0xff]  ;;  %v558_v37 = vpack.c.bf16 %v164_v35, %v163_v30  ;;  %v55_v42 = vld [vmem:[#allocation2 + $0x50] sm:$0xff] }
  0x1d   :  { %v166_v39 = vld [vmem:[%s832_s3 + $0x28] sm:$0xff]  ;;  %v540_v40 = vpack.c.bf16 %v54_v32, %v53_v26  ;;  %v542_v41 = vpack.c.bf16 %v72_v36, %v71_v33  ;;  %v56_v43 = vld [vmem:[#allocation2 + $0x58] sm:$0xff]  ;;  %v73_v44 = vld [vmem:[#allocation2 + $0xe0] sm:$0xff] }
  0x1e   :  { %555 = vmatprep.subr.bf16.mxu1 %v554_v34  ;;  %v562_v45 = vpack.c.bf16 %v166_v39, %v165_v38  ;;  %v74_v46 = vld [vmem:[#allocation2 + $0xe8] sm:$0xff]  ;;  %v167_v47 = vld [vmem:[%s832_s3 + $0x30] sm:$0xff]  ;;  %v168_v48 = vld [vmem:[%s832_s3 + $0x38] sm:$0xff]  ;;  %v544_v49 = vpack.c.bf16 %v56_v43, %v55_v42 }
  0x1f   :  { %533 = vmatpush3.bf16.msra.mxu0 %v532_v19  ;;  %557 = vmatpush3.bf16.msra.mxu1 %v554_v34  ;;  %v546_v50 = vpack.c.bf16 %v74_v46, %v73_v44  ;;  %v57_v51 = vld [vmem:[#allocation2 + $0x60] sm:$0xff]  ;;  %v58_v52 = vld [vmem:[#allocation2 + $0x68] sm:$0xff]  ;;  %v75_v53 = vld [vmem:[#allocation2 + $0xf0] sm:$0xff]  ;;  %v566_v54 = vpack.c.bf16 %v168_v48, %v167_v47 }
  0x20   :  { %535 = vmatprep.subr.bf16.mxu0 %v534_v20  ;;  %559 = vmatprep.subr.bf16.mxu1 %v558_v37  ;;  %v76_v55 = vld [vmem:[#allocation2 + $0xf8] sm:$0xff]  ;;  %v169_v56 = vld [vmem:[%s832_s3 + $0x40] sm:$0xff]  ;;  %v170_v57 = vld [vmem:[%s832_s3 + $0x48] sm:$0xff]  ;;  %v548_v58 = vpack.c.bf16 %v58_v52, %v57_v51 }
  0x21   :  { %v550_v59 = vpack.c.bf16 %v76_v55, %v75_v53  ;;  %v59_v60 = vld [vmem:[#allocation2 + $0x70] sm:$0xff]  ;;  %v60_v61 = vld [vmem:[#allocation2 + $0x78] sm:$0xff]  ;;  %v570_v62 = vpack.c.bf16 %v170_v57, %v169_v56  ;;  %v41_v0 = vld [vmem:[%s829_s0] sm:$0xff] }
  0x22   :  { %v552_v63 = vpack.c.bf16 %v60_v61, %v59_v60  ;;  %v44_v1 = vld [vmem:[%s829_s0 + $0x18] sm:$0xff]  ;;  %v43_v2 = vld [vmem:[%s829_s0 + $0x10] sm:$0xff]  ;;  %v173_v6 = vld [vmem:[%s832_s3 + $0x60] sm:$0xff] }
  0x23   :  { %537 = vmatpush3.bf16.msra.mxu0 %v536_v27  ;;  %561 = vmatpush3.bf16.msra.mxu1 %v558_v37  ;;  %v171_v3 = vld [vmem:[%s832_s3 + $0x50] sm:$0xff]  ;;  %v172_v4 = vld [vmem:[%s832_s3 + $0x58] sm:$0xff]  ;;  %v174_v7 = vld [vmem:[%s832_s3 + $0x68] sm:$0xff] }
  0x24   :  { %539 = vmatprep.subr.bf16.mxu0 %v538_v31  ;;  %563 = vmatprep.subr.bf16.mxu1 %v562_v45  ;;  %v574_v5 = vpack.c.bf16 %v172_v4, %v171_v3  ;;  %v578_v8 = vpack.c.bf16 %v174_v7, %v173_v6  ;;  %v175_v9 = vld [vmem:[%s832_s3 + $0x70] sm:$0xff]  ;;  %v176_v10 = vld [vmem:[%s832_s3 + $0x78] sm:$0xff]  ;;  %v261_v12 = vld [vmem:[%s834_s5] sm:$0xff] }
  0x25   :  { %v582_v11 = vpack.c.bf16 %v176_v10, %v175_v9  ;;  %v262_v13 = vld [vmem:[%s834_s5 + $0x8] sm:$0xff]  ;;  %v263_v14 = vld [vmem:[%s834_s5 + $0x10] sm:$0xff]  ;;  %v264_v16 = vld [vmem:[%s834_s5 + $0x18] sm:$0xff] }
  0x26   :  { %v586_v15 = vpack.c.bf16 %v262_v13, %v261_v12  ;;  %v590_v17 = vpack.c.bf16 %v264_v16, %v263_v14  ;;  %v265_v18 = vld [vmem:[%s834_s5 + $0x20] sm:$0xff]  ;;  %v266_v19 = vld [vmem:[%s834_s5 + $0x28] sm:$0xff]  ;;  %v267_v32 = vld [vmem:[%s834_s5 + $0x30] sm:$0xff] }
  0x27   :  { %541 = vmatpush3.bf16.msra.mxu0 %v540_v40  ;;  %565 = vmatpush3.bf16.msra.mxu1 %v562_v45  ;;  %v594_v20 = vpack.c.bf16 %v266_v19, %v265_v18  ;;  %v397_v23 = vld [vmem:[%s831_s2] ss:$0 sm:$0xff]  ;;  %v268_v33 = vld [vmem:[%s834_s5 + $0x38] sm:$0xff] }
  0x28   :  { %543 = vmatprep.subr.bf16.mxu0 %v542_v41  ;;  %567 = vmatprep.subr.bf16.mxu1 %v566_v54  ;;  %v598_v34 = vpack.c.bf16 %v268_v33, %v267_v32  ;;  %v398_v35 = vld [vmem:[%s833_s4] ss:$0 sm:$0xff]  ;;  %s665_s4 = smov [#allocation5]  }
  0x29   :  { %v399_v42 = vld [vmem:[%s835_s6] ss:$0 sm:$0xff]  ;;  %s385_s5 = sshll.u32 %s665_s4, 4  ;;  %s386_s5 = int_to_ptr.vmem [resolvable:$true] %s385_s5 }
  0x2a   :  { %s636_s6 = scalar_lea.vmem %s386_s5, 256  ;;  %p641_p9 = scmp.lt.s32.totalorder %s386_s5, %s386_s5 }
  0x2b   :  { %545 = vmatpush3.bf16.msra.mxu0 %v544_v49  ;;  %569 = vmatpush3.bf16.msra.mxu1 %v566_v54  ;;  %p637_p8 = scmp.ne.s32.totalorder %s386_s5, %s636_s6  ;;  %p642_p10 = scmp.lt.s32.totalorder %s636_s6, %s636_s6 }
  0x2c   :  { %547 = vmatprep.subr.bf16.mxu0 %v546_v50  ;;  %571 = vmatprep.subr.bf16.mxu1 %v570_v62 }
  0x2d   :  { %p643_p11 = por %p642_p10, %p641_p9 }
  0x2f   :  { %549 = vmatpush3.bf16.msra.mxu0 %v548_v58  ;;  %573 = vmatpush3.bf16.msra.mxu1 %v570_v62  ;;  %p644_p12 = pnand %p643_p11, %p637_p8 }
  0x30   :  { %551 = vmatprep.subr.bf16.mxu0 %v550_v59  ;;  %575 = vmatprep.subr.bf16.mxu1 %v574_v5 }
  0x33   :  { %553 = vmatpush3.bf16.msra.mxu0 %v552_v63  ;;  %577 = vmatpush3.bf16.msra.mxu1 %v574_v5 }
  0x34   :  { %579 = vmatprep.subr.bf16.mxu1 %v578_v8  ;;  %587 = vmatprep.subr.bf16.mxu0 %v586_v15 }
  0x36   :  { %149 = vmatmul.mubr.f32.vlgmr.msra.gmra.mrb[0].mxu0 %v41_v0 }
  0x37   :  { %153 = vmatprep.mubr.f32.mxu0 %v44_v1  ;;  %581 = vmatpush3.bf16.msra.mxu1 %v578_v8 }
  0x38   :  { %583 = vmatprep.subr.bf16.mxu1 %v582_v11  ;;  %589 = vmatpush3.bf16.msra.mxu0 %v586_v15 }
  0x39   :  { %591 = vmatprep.subr.bf16.mxu0 %v590_v17 }
  0x3a   :  { %154 = vmatmul.mubr.f32.gmra.mrb[2].mxu0 %v43_v2 }
  0x3b   :  { %585 = vmatpush3.bf16.msra.mxu1 %v582_v11 }
  0x3c   :  { %593 = vmatpush3.bf16.msra.mxu0 %v590_v17 }
  0x3d   :  { %595 = vmatprep.subr.bf16.mxu0 %v594_v20 }
  0x40   :  { %597 = vmatpush3.bf16.msra.mxu0 %v594_v20 }
  0x41   :  { %599 = vmatprep.subr.bf16.mxu0 %v598_v34 }
  0x44   :  { %601 = vmatpush3.bf16.msra.mxu0 %v598_v34 }
 0x109   :  { %v434_v21 = vpop.f32.mrb[0].mxu0 }
 0x10a   :  { %v435_v22 = vpop.f32.mrb[1].mxu0 }
 0x10b   :  { %v436_v24 = vadd.f32 %v435_v22, %v434_v21 }
 0x10d   :  { %v437_v25 = vpop.f32.mrb[2].mxu0  ;;  %v151_v26 = vadd.f32 %v436_v24, %v397_v23 }
 0x10e   :  { %v438_v27 = vpop.f32.mrb[3].mxu0 }
 0x10f   :  { %v439_v28 = vadd.f32 %v438_v27, %v437_v25  ;;  %v159_v29 = vmax.f32 %v151_v26, 0.0 }
 0x111   :  { %v156_v30 = vadd.f32 %v439_v28, %v397_v23  ;;  %500 = vmatprep.mubr.f32.mxu1 %v159_v29 }
 0x113   :  { %v160_v31 = vmax.f32 %v156_v30, 0.0 }
 0x115   :  { %501 = vmatmul.mubr.f32.vlgmr.msra.gmra.mrb[0].mxu1 %v160_v31 }
 0x1e8   :  { %v502_v36 = vpop.f32.mrb[0].mxu1 }
 0x1e9   :  { %v256_v37 = vadd.f32 %v502_v36, %v398_v35  ;;  %v250_v38 = vpop.f32.mrb[1].mxu1 }
 0x1ea   :  { %v251_v39 = vadd.f32 %v398_v35, %v250_v38 }
 0x1eb   :  { %v260_v41 = vmax.f32 %v256_v37, 0.0 }
 0x1ec   :  { %v259_v40 = vmax.f32 %v251_v39, 0.0 }
 0x1ee   :  { %519 = vmatprep.mubr.msk.f32.mxu0 %vm276_vm0, %v259_v40 }
 0x1ef   :  { %520 = vmatmul.mubr.msk.f32.vlgmr.msra.gmra.mrb[4].mxu0 %vm276_vm0, %v260_v41 }
 0x2c2   :  { %v521_v43 = vpop.f32.mrb[4].mxu0 }
 0x2c3   :  { %v349_v44 = vpop.f32.mrb[5].mxu0  ;;  %v355_v46 = vadd.f32 %v521_v43, %v399_v42 }
 0x2c4   :  { %v350_v45 = vadd.f32 %v399_v42, %v349_v44 }
 0x2c6   :  { %358 = vmax.xlane.f32.xlu0 %v350_v45 }
 0x2ca   :  { %360 = vmax.xlane.f32.xlu0 %v355_v46 }
 0x353   :  { %v359_v47 = vpop.xlane.xlu0 %358 }
 0x354   :  { %v362_v48 = vsub.f32 %v350_v45, %v359_v47 }
 0x356   :  { %v364_v49 = vmul.f32 1.442695, %v362_v48 }
 0x357   :  { %v361_v50 = vpop.xlane.xlu0 %360 }
 0x358   :  { %v363_v51 = vsub.f32 %v355_v46, %v361_v50  ;;  %606 = vpow2.f32 %v364_v49 }
 0x35a   :  { %v366_v52 = vmul.f32 1.442695, %v363_v51 }
 0x35c   :  { %608 = vpow2.f32 %v366_v52 }
 0x362   :  { %v607_v53 = vpop.eup %606 }
 0x363   :  { %368 = vadd.xlane.f32.xlu1 %v607_v53 }
 0x366   :  { %v609_v54 = vpop.eup %608 }
 0x367   :  { %370 = vadd.xlane.f32.xlu1 %v609_v54 }
 0x3f0   :  { %v369_v55 = vpop.xlane.xlu1 %368 }
 0x3f1   :  { %610 = vlog2.f32 %v369_v55 }
 0x3f4   :  { %v371_v56 = vpop.xlane.xlu1 %370 }
 0x3f5   :  { %612 = vlog2.f32 %v371_v56 }
 0x3fb   :  { %v611_v57 = vpop.eup %610 }
 0x3fc   :  { %v373_v58 = vmul.f32 0.6931472, %v611_v57 }
 0x3fe   :  { %v376_v59 = vsub.f32 %v362_v48, %v373_v58 }
 0x3ff   :  { %v613_v60 = vpop.eup %612 }
 0x400   :  { %378 = vst [vmem:[#allocation5] sm:$0xff] %v376_v59  ;;  %v375_v61 = vmul.f32 0.6931472, %v613_v60 }
 0x402   :  { %v377_v62 = vsub.f32 %v363_v51, %v375_v61 }
 0x404   :  { %379 = vst [vmem:[#allocation5 + $0x8] sm:$0xff] %v377_v62 }
 0x405   :  { %647 = shalt.err (!%p644_p12)
}
 0x406   :  { %s648_s30 = scalar_lea.hbm %s836_s7, 256 }
 0x407   :  { %p649_p13 = scmp.ne.s32.totalorder %s836_s7, %s648_s30  ;;  %p652_p0 = scmp.lt.u32.totalorder %s648_s30, %s836_s7 }
 0x409   :  { %p654_p1 = pnand %p652_p0, %p649_p13 }
 0x40b   :  { %657 = shalt.err (!%p654_p1)
}
 0x40c   :  { %391 = dma.vmem_to_hbm [thread:$0]  %s386_s5, 256, %s836_s7, [#allocation4], %s663_s11, %s663_s11, %s664_s12  }
 0x40d   :  { %660 = dma.done.wait [#allocation4], 256  }
 0x40e   :  { %661 = vsyncadd [#allocation4], 4294967040 }
 0x40f   :  { %395 = vsyncpa [#allocation3], 1 }
 0x410   :  { %396 = vsyncpa [#allocation4], 1 }

</bundles_post_ra>
